<compile_context>
chip_gen: v5e
topology: v5e:2x2
jax: 0.10.0
libtpu: 0.0.40
codegen_flags: <defaults>
</compile_context>

<pallas_src>
import jax
import jax.numpy as jnp
from jax import lax
from jax.experimental import pallas as pl
from jax.experimental.pallas import tpu as pltpu

# Fixed smoothing kernel from the PyTorch buffer (symmetric, so conv == cross-correlation).
CONV_TAPS = (0.0099, 0.0301, 0.0587, 0.0733, 0.0587, 0.0301, 0.0099)
PAD = 3  # F.conv1d(..., padding=3)


# ----------------------------- MLP kernel ------------------------------------
def _make_mlp_kernel(compute_dtype):
    def _mlp_kernel(x_ref, w1_ref, b1_ref, w2_ref, b2_ref, w3_ref, b3_ref, o_ref):
        # x_ref: (tm, D) rows of the flattened (M, D) f32 input; cast in-kernel (cheap VPU pack).
        x = x_ref[...].astype(compute_dtype)

        # Layer 1 (MXU, f32 accumulation), bias + LeakyReLU(0.1) in f32; dropout1 = identity.
        h = jnp.dot(x, w1_ref[...], preferred_element_type=jnp.float32) + b1_ref[...]
        h = jnp.where(h >= 0.0, h, 0.1 * h)

        # Layer 2 (MXU); cast activations to the matmul dtype (no-op in the f32 path).
        h = h.astype(compute_dtype)
        h = jnp.dot(h, w2_ref[...], preferred_element_type=jnp.float32) + b2_ref[...]
        h = jnp.where(h >= 0.0, h, 0.1 * h)        # (tm, H2) f32; dropout2 = identity

        # Layer 3 (out_features=1): contract the H2 axis of w3_row (1, H2) against the H2 axis of
        # h (tm, H2) -> (1, tm), lane-dense, no materialized transpose of h.
        o = lax.dot_general(
            w3_ref[...], h,
            dimension_numbers=(((1,), (1,)), ((), ())),
            preferred_element_type=jnp.float32) + b3_ref[...]
        o_ref[...] = jnp.tanh(o).astype(o_ref.dtype)   # (1, tm) lane-dense store

    return _mlp_kernel


def mlp_forward(x2d, w1c, b1, w2c, b2, w3_row, b3, *, tm, compute_dtype,
                vmem_limit_bytes=None):
    """x2d: (M, D) f32.  Returns (1, M) f32 = tanh(MLP(x)) rows, lane-dense."""
    M, D = x2d.shape
    H1 = w1c.shape[1]
    H2 = w2c.shape[1]

    if M <= tm:
        tm_eff = M                      # single block: block dims == full array dims (legal)
    else:
        tm_eff = tm                     # multiple of 256; ragged final block handled by Pallas
    grid = pl.cdiv(M, tm_eff)

    itemsize = jnp.dtype(x2d.dtype).itemsize
    flops = 2 * M * (D * H1 + H1 * H2 + H2)
    bytes_accessed = (M * D + D * H1 + H1 * H2 + H2 + H1 + H2 + 1) * itemsize + M * 4

    return pl.pallas_call(
        _make_mlp_kernel(compute_dtype),
        out_shape=jax.ShapeDtypeStruct((1, M), jnp.float32),
        grid_spec=pltpu.PrefetchScalarGridSpec(
            num_scalar_prefetch=0,
            grid=(grid,),
            in_specs=[
                pl.BlockSpec((tm_eff, D), lambda i: (i, 0)),   # streamed x rows (f32 from HBM)
                pl.BlockSpec((D, H1), lambda i: (0, 0)),       # weights: constant index_maps,
                pl.BlockSpec((1, H1), lambda i: (0, 0)),       # fetched once and kept resident
                pl.BlockSpec((H1, H2), lambda i: (0, 0)),
                pl.BlockSpec((1, H2), lambda i: (0, 0)),
                pl.BlockSpec((1, H2), lambda i: (0, 0)),       # w3 as a row vector
                pl.BlockSpec((1, 1), lambda i: (0, 0)),
            ],
            out_specs=pl.BlockSpec((1, tm_eff), lambda i: (0, i)),  # lane-dense output row
        ),
        compiler_params=pltpu.CompilerParams(
            dimension_semantics=("parallel",),
            vmem_limit_bytes=vmem_limit_bytes),
        cost_estimate=pl.CostEstimate(
            flops=flops, transcendentals=M, bytes_accessed=bytes_accessed),
    )(x2d, w1c, b1, w2c, b2, w3_row, b3)


# ----------------------------- Full forward -----------------------------------
def three_fc_layer_forward(x, params, *, tm=1024, compute_dtype=jnp.float32,
                           vmem_limit_bytes=None):
    """x: (B, S, D) float32 -> (B, 1, S) float32 (matches PyTorch forward in eval mode).

    tm: row tile for large inputs (multiple of 256; 1024 fits v5e's 16 MiB default scoped VMEM
        in f32; raise it together with vmem_limit_bytes on v6e/v7x, keeping the grid >= 2 and
        even on v7x so both TensorCores are used).
    compute_dtype: jnp.bfloat16 enables the fast MXU path on v6e/v7x; the cast happens inside
        the kernel (x stays f32 in HBM), accumulation stays f32.
    """
    B, S, D = x.shape
    w1, b1, w2, b2, w3, b3 = params
    H2 = w2.shape[1]

    M = B * S
    x2d = x.reshape(M, D)                           # free reshape; no pad, no astype copy

    # Weight casts are tiny (one-time, fetched once by the kernel); biases / layer-3 stay f32.
    w1c = w1.astype(compute_dtype)
    w2c = w2.astype(compute_dtype)
    w3_row = w3.reshape(1, H2).astype(jnp.float32)

    out = mlp_forward(x2d, w1c, b1, w2c, b2, w3_row, b3,
                      tm=tm, compute_dtype=compute_dtype,
                      vmem_limit_bytes=vmem_limit_bytes)        # (1, M)
    o = out[0, :M].reshape(B, S)                    # flatten(1)/unsqueeze handled by layout

    # 7-tap smoothing conv (bias-free, symmetric taps) as plain JAX glue: tiny compute,
    # avoids a second pallas_call launch and an extra HBM round trip.
    op = jnp.pad(o, ((0, 0), (PAD, PAD)))
    y = sum(CONV_TAPS[k] * op[:, k:k + S] for k in range(len(CONV_TAPS)))
    return y[:, None, :]


def init_params(key, input_dim=724, hidden_dim=128):
    """Deterministic init mimicking nn.Linear default (uniform +-1/sqrt(fan_in)).
    Weights are stored already transposed to (in, out) so the kernel does x @ W."""
    h2 = hidden_dim // 2
    ks = jax.random.split(key, 6)

    def lin(kw, kb, fan_in, fan_out):
        bound = 1.0 / (fan_in ** 0.5)
        w = jax.random.uniform(kw, (fan_in, fan_out), jnp.float32, -bound, bound)
        b = jax.random.uniform(kb, (1, fan_out), jnp.float32, -bound, bound)
        return w, b

    w1, b1 = lin(ks[0], ks[1], input_dim, hidden_dim)
    w2, b2 = lin(ks[2], ks[3], hidden_dim, h2)
    w3, b3 = lin(ks[4], ks[5], h2, 1)
    return (w1, b1, w2, b2, w3, b3)


# ----------------------------- Reference (plain JAX) ---------------------------
def _reference(x, params):
    w1, b1, w2, b2, w3, b3 = params
    h = x @ w1 + b1
    h = jnp.where(h >= 0, h, 0.1 * h)
    h = h @ w2 + b2
    h = jnp.where(h >= 0, h, 0.1 * h)
    o = jnp.tanh(h @ w3 + b3)                      # (B, S, 1)
    o = o[..., 0]                                  # (B, S)
    op = jnp.pad(o, ((0, 0), (PAD, PAD)))
    y = sum(CONV_TAPS[k] * op[:, k:k + o.shape[1]] for k in range(7))
    return y[:, None, :]


if __name__ == "__main__":
    B, S, INPUT_DIM, HIDDEN = 2, 8, 724, 128

    key = jax.random.PRNGKey(0)
    kx, kp = jax.random.split(key)
    x = jax.random.normal(kx, (B, S, INPUT_DIM), jnp.float32)
    params = init_params(kp, INPUT_DIM, HIDDEN)

    ref = _reference(x, params)

    # f32 path: strict validation.
    out = jax.block_until_ready(three_fc_layer_forward(x, params))
    assert out.shape == (B, 1, S), out.shape
    assert jnp.allclose(out, ref, atol=1e-5, rtol=1e-5), float(jnp.max(jnp.abs(out - ref)))

    # bf16 MXU path (in-kernel cast, f32 accumulation): loose tolerance.
    out_bf16 = jax.block_until_ready(
        three_fc_layer_forward(x, params, compute_dtype=jnp.bfloat16))
    assert out_bf16.shape == (B, 1, S), out_bf16.shape
    assert jnp.allclose(out_bf16, ref, atol=5e-2, rtol=5e-2), \
        float(jnp.max(jnp.abs(out_bf16 - ref)))

    print("KERNEL_OK")
</pallas_src>

<mosaic_0001>
module attributes {stable_mosaic.version = 11 : i64} {
  func.func @_mlp_kernel(%arg0: i32, %arg1: memref<16x724xf32, #tpu.memory_space<vmem>>, %arg2: memref<724x128xf32, #tpu.memory_space<vmem>>, %arg3: memref<1x128xf32, #tpu.memory_space<vmem>>, %arg4: memref<128x64xf32, #tpu.memory_space<vmem>>, %arg5: memref<1x64xf32, #tpu.memory_space<vmem>>, %arg6: memref<1x64xf32, #tpu.memory_space<vmem>>, %arg7: memref<1x1xf32, #tpu.memory_space<vmem>>, %arg8: memref<1x16xf32, #tpu.memory_space<vmem>>) attributes {dimension_semantics = [#tpu.dimension_semantics<parallel>], iteration_bounds = array<i64: 1>, scalar_prefetch = 0 : i64, scratch_operands = 0 : i64, tpu.core_type = #tpu.core_type<tc>, window_params = [{transform_indices = @transform_0, window_bounds = array<i64: 16, 724>}, {pipeline_mode = #tpu.pipeline_mode<synchronous>, transform_indices = @transform_1, window_bounds = array<i64: 724, 128>}, {pipeline_mode = #tpu.pipeline_mode<synchronous>, transform_indices = @transform_2, window_bounds = array<i64: 1, 128>}, {pipeline_mode = #tpu.pipeline_mode<synchronous>, transform_indices = @transform_3, window_bounds = array<i64: 128, 64>}, {pipeline_mode = #tpu.pipeline_mode<synchronous>, transform_indices = @transform_4, window_bounds = array<i64: 1, 64>}, {pipeline_mode = #tpu.pipeline_mode<synchronous>, transform_indices = @transform_5, window_bounds = array<i64: 1, 64>}, {pipeline_mode = #tpu.pipeline_mode<synchronous>, transform_indices = @transform_6, window_bounds = array<i64: 1, 1>}, {transform_indices = @transform_7, window_bounds = array<i64: 1, 16>}]} {
    %c0 = arith.constant 0 : index
    %c0_0 = arith.constant 0 : index
    %0 = vector.load %arg1[%c0, %c0_0] : memref<16x724xf32, #tpu.memory_space<vmem>>, vector<16x724xf32>
    %c0_1 = arith.constant 0 : index
    %c0_2 = arith.constant 0 : index
    %1 = vector.load %arg2[%c0_1, %c0_2] : memref<724x128xf32, #tpu.memory_space<vmem>>, vector<724x128xf32>
    %cst = arith.constant dense<0.000000e+00> : vector<16x128xf32>
    %2 = tpu.matmul %0, %1, %cst {dimension_numbers = #tpu.dot_dimension_numbers<[1], [0], [0], [1], [0, 0, 1, 1], [], []>} : vector<16x724xf32>, vector<724x128xf32>, vector<16x128xf32> -> vector<16x128xf32>
    %c0_3 = arith.constant 0 : index
    %c0_4 = arith.constant 0 : index
    %3 = vector.load %arg3[%c0_3, %c0_4] : memref<1x128xf32, #tpu.memory_space<vmem>>, vector<1x128xf32>
    %4 = vector.broadcast %3 : vector<1x128xf32> to vector<16x128xf32>
    %5 = arith.addf %2, %4 : vector<16x128xf32>
    %cst_5 = arith.constant 0.000000e+00 : f32
    %6 = vector.broadcast %cst_5 : f32 to vector<16x128xf32>
    %7 = arith.cmpf oge, %5, %6 : vector<16x128xf32>
    %cst_6 = arith.constant 1.000000e-01 : f32
    %8 = vector.broadcast %cst_6 : f32 to vector<16x128xf32>
    %9 = arith.mulf %8, %5 : vector<16x128xf32>
    %10 = arith.select %7, %5, %9 : vector<16x128xi1>, vector<16x128xf32>
    %c0_7 = arith.constant 0 : index
    %c0_8 = arith.constant 0 : index
    %11 = vector.load %arg4[%c0_7, %c0_8] : memref<128x64xf32, #tpu.memory_space<vmem>>, vector<128x64xf32>
    %cst_9 = arith.constant dense<0.000000e+00> : vector<16x64xf32>
    %12 = tpu.matmul %10, %11, %cst_9 {dimension_numbers = #tpu.dot_dimension_numbers<[1], [0], [0], [1], [0, 0, 1, 1], [], []>} : vector<16x128xf32>, vector<128x64xf32>, vector<16x64xf32> -> vector<16x64xf32>
    %c0_10 = arith.constant 0 : index
    %c0_11 = arith.constant 0 : index
    %13 = vector.load %arg5[%c0_10, %c0_11] : memref<1x64xf32, #tpu.memory_space<vmem>>, vector<1x64xf32>
    %14 = vector.broadcast %13 : vector<1x64xf32> to vector<16x64xf32>
    %15 = arith.addf %12, %14 : vector<16x64xf32>
    %cst_12 = arith.constant 0.000000e+00 : f32
    %16 = vector.broadcast %cst_12 : f32 to vector<16x64xf32>
    %17 = arith.cmpf oge, %15, %16 : vector<16x64xf32>
    %cst_13 = arith.constant 1.000000e-01 : f32
    %18 = vector.broadcast %cst_13 : f32 to vector<16x64xf32>
    %19 = arith.mulf %18, %15 : vector<16x64xf32>
    %20 = arith.select %17, %15, %19 : vector<16x64xi1>, vector<16x64xf32>
    %c0_14 = arith.constant 0 : index
    %c0_15 = arith.constant 0 : index
    %21 = vector.load %arg6[%c0_14, %c0_15] : memref<1x64xf32, #tpu.memory_space<vmem>>, vector<1x64xf32>
    %cst_16 = arith.constant dense<0.000000e+00> : vector<1x16xf32>
    %22 = tpu.matmul %21, %20, %cst_16 {dimension_numbers = #tpu.dot_dimension_numbers<[1], [1], [0], [0], [0, 0, 1, 0], [], []>} : vector<1x64xf32>, vector<16x64xf32>, vector<1x16xf32> -> vector<1x16xf32>
    %c0_17 = arith.constant 0 : index
    %c0_18 = arith.constant 0 : index
    %23 = vector.load %arg7[%c0_17, %c0_18] : memref<1x1xf32, #tpu.memory_space<vmem>>, vector<1x1xf32>
    %24 = vector.broadcast %23 : vector<1x1xf32> to vector<1x16xf32>
    %25 = arith.addf %22, %24 : vector<1x16xf32>
    %26 = math.tanh %25 : vector<1x16xf32>
    %c0_19 = arith.constant 0 : index
    %c0_20 = arith.constant 0 : index
    %27 = vector.load %arg8[%c0_19, %c0_20] : memref<1x16xf32, #tpu.memory_space<vmem>>, vector<1x16xf32>
    tpu.vector_store %arg8[%c0_19, %c0_20], %26 {strides = array<i32>} : memref<1x16xf32, #tpu.memory_space<vmem>>, vector<1x16xf32>,
    return
  }
  func.func @transform_0(%arg0: i32) -> (i32, i32) {
    %c0_i32 = arith.constant 0 : i32
    %c0_i32_0 = arith.constant 0 : i32
    return %arg0, %c0_i32 : i32, i32
  }
  func.func @transform_1(%arg0: i32) -> (i32, i32) {
    %c0_i32 = arith.constant 0 : i32
    %c0_i32_0 = arith.constant 0 : i32
    %c0_i32_1 = arith.constant 0 : i32
    return %c0_i32, %c0_i32_0 : i32, i32
  }
  func.func @transform_2(%arg0: i32) -> (i32, i32) {
    %c0_i32 = arith.constant 0 : i32
    %c0_i32_0 = arith.constant 0 : i32
    %c0_i32_1 = arith.constant 0 : i32
    return %c0_i32, %c0_i32_0 : i32, i32
  }
  func.func @transform_3(%arg0: i32) -> (i32, i32) {
    %c0_i32 = arith.constant 0 : i32
    %c0_i32_0 = arith.constant 0 : i32
    %c0_i32_1 = arith.constant 0 : i32
    return %c0_i32, %c0_i32_0 : i32, i32
  }
  func.func @transform_4(%arg0: i32) -> (i32, i32) {
    %c0_i32 = arith.constant 0 : i32
    %c0_i32_0 = arith.constant 0 : i32
    %c0_i32_1 = arith.constant 0 : i32
    return %c0_i32, %c0_i32_0 : i32, i32
  }
  func.func @transform_5(%arg0: i32) -> (i32, i32) {
    %c0_i32 = arith.constant 0 : i32
    %c0_i32_0 = arith.constant 0 : i32
    %c0_i32_1 = arith.constant 0 : i32
    return %c0_i32, %c0_i32_0 : i32, i32
  }
  func.func @transform_6(%arg0: i32) -> (i32, i32) {
    %c0_i32 = arith.constant 0 : i32
    %c0_i32_0 = arith.constant 0 : i32
    %c0_i32_1 = arith.constant 0 : i32
    return %c0_i32, %c0_i32_0 : i32, i32
  }
  func.func @transform_7(%arg0: i32) -> (i32, i32) {
    %c0_i32 = arith.constant 0 : i32
    %c0_i32_0 = arith.constant 0 : i32
    return %c0_i32, %arg0 : i32, i32
  }
}

</mosaic_0001>

<bundles_post_ra>
// kernel: tpu_custom_call.1
= control target key start
LH: loop header
LB: loop body
LE: loop exit
PB: predicated region body
PF: predicated region fallthrough
CT: control target
= control target key end

     0   :  { %s629_s0 = inlined_call_operand.vmem [shape: f32[16,724], index: 0, kind: input, shape index: {}]   ;;  %s630_s1 = inlined_call_operand.hbm [shape: f32[724,128], index: 1, kind: input, shape index: {}]   ;;  %s631_s2 = inlined_call_operand.vmem [shape: f32[1,128], index: 2, kind: input, shape index: {}]   ;;  %s632_s3 = inlined_call_operand.vmem [shape: f32[128,64], index: 3, kind: input, shape index: {}]   ;;  %s633_s4 = inlined_call_operand.vmem [shape: f32[1,64], index: 4, kind: input, shape index: {}]   ;;  %s634_s5 = inlined_call_operand.vmem [shape: f32[1,64], index: 5, kind: input, shape index: {}]   ;;  %s635_s6 = inlined_call_operand.<no memory space> [shape: f32[1,1], index: 6, kind: input, shape index: {}]   ;;  %s636_s7 = inlined_call_operand.hbm [shape: f32[1,16], index: 7, kind: output, shape index: {}]  }
   0x1   :  { %v12_v0 = vstv %s635_s6 }
   0x2   :  { %13 = vst [vmem:[#allocation2] sm:$0x1] %v12_v0 }
   0x3   :  { %14 = vsyncpa [#allocation4], 0 }
   0x4   :  { %15 = vsyncpa [#allocation5], 0  ;;  %s22_s28 = sshll.u32 %s630_s1, 4  ;;  %s482_s29 = smov [#allocation3]   ;;  %s23_s28 = int_to_ptr.hbm [resolvable:$true] %s22_s28 }
   0x5   :  { %s24_s30 = sshll.u32 %s482_s29, 4  ;;  %s483_s8 = smov 128   ;;  %s25_s30 = int_to_ptr.vmem [resolvable:$true] %s24_s30 }
   0x6   :  { %s484_s9 = smov 8  }
   0x7   :  { %30 = dma.hbm_to_vmem [thread:$0]  %s23_s28, 11648, %s25_s30, [#allocation4], %s483_s8, %s483_s8, %s484_s9  }
   0x8   :  { %478 = dma.done.wait [#allocation4], 11648  }
   0x9   :  { %479 = vsyncadd [#allocation4], 4294955648  ;;  %v72_v1 = vld [vmem:[#allocation3 + $0x78] sm:$0xff]  ;;  %v71_v2 = vld [vmem:[#allocation3 + $0x70] sm:$0xff]  ;;  %vm159_vm0 = vcmask 1043456   ;;  %vm152_vm1 = vcmask 687104  }
   0xa   :  { %163 = vmatpush.msra.mxu0 %v72_v1  ;;  %v70_v3 = vld [vmem:[#allocation3 + $0x68] sm:$0xff]  ;;  %v88_v4 = vld [vmem:[#allocation3 + $0xf8] sm:$0xff]  ;;  %v87_v6 = vld [vmem:[#allocation3 + $0xf0] sm:$0xff]  ;;  %vm364_vm5 = vcmask 523264   ;;  %s404_s20 = sshll.u32 %s636_s7, 4  ;;  %vm395_vm7 = vcmask 122880   ;;  %s405_s20 = int_to_ptr.hbm [resolvable:$true] %s404_s20 }
   0xb   :  { %v104_v5 = vld [vmem:[#allocation3 + $0x178] sm:$0xff]  ;;  %186 = vmatpush.msra.mxu1 %v88_v4  ;;  %v103_v7 = vld [vmem:[#allocation3 + $0x170] sm:$0xff]  ;;  %v69_v8 = vld [vmem:[#allocation3 + $0x60] sm:$0xff] }
   0xc   :  { %164 = vmatpush.msra.mxu0 %v71_v2  ;;  %209 = vmatpush.msra.mxu2 %v104_v5  ;;  %v120_v9 = vld [vmem:[#allocation3 + $0x1f8] sm:$0xff]  ;;  %v86_v10 = vld [vmem:[#allocation3 + $0xe8] sm:$0xff]  ;;  %v119_v12 = vld [vmem:[#allocation3 + $0x1f0] sm:$0xff] }
   0xd   :  { %187 = vmatpush.msra.mxu1 %v87_v6  ;;  %v102_v11 = vld [vmem:[#allocation3 + $0x168] sm:$0xff]  ;;  %v68_v13 = vld [vmem:[#allocation3 + $0x58] sm:$0xff]  ;;  %232 = vmatpush.msra.mxu3 %v120_v9  ;;  %v85_v14 = vld [vmem:[#allocation3 + $0xe0] sm:$0xff] }
   0xe   :  { %165 = vmatpush.msra.mxu0 %v70_v3  ;;  %210 = vmatpush.msra.mxu2 %v103_v7  ;;  %v101_v15 = vld [vmem:[#allocation3 + $0x160] sm:$0xff]  ;;  %v118_v16 = vld [vmem:[#allocation3 + $0x1e8] sm:$0xff]  ;;  %v67_v17 = vld [vmem:[#allocation3 + $0x50] sm:$0xff] }
   0xf   :  { %188 = vmatpush.msra.mxu1 %v86_v10  ;;  %233 = vmatpush.msra.mxu3 %v119_v12  ;;  %v84_v18 = vld [vmem:[#allocation3 + $0xd8] sm:$0xff]  ;;  %v117_v20 = vld [vmem:[#allocation3 + $0x1e0] sm:$0xff]  ;;  %v66_v21 = vld [vmem:[#allocation3 + $0x48] sm:$0xff] }
  0x10   :  { %166 = vmatpush.msra.mxu0 %v69_v8  ;;  %211 = vmatpush.msra.mxu2 %v102_v11  ;;  %v100_v19 = vld [vmem:[#allocation3 + $0x158] sm:$0xff]  ;;  %v83_v22 = vld [vmem:[#allocation3 + $0xd0] sm:$0xff]  ;;  %v65_v25 = vld [vmem:[#allocation3 + $0x40] sm:$0xff] }
  0x11   :  { %189 = vmatpush.msra.mxu1 %v85_v14  ;;  %234 = vmatpush.msra.mxu3 %v118_v16  ;;  %v99_v23 = vld [vmem:[#allocation3 + $0x150] sm:$0xff]  ;;  %v116_v24 = vld [vmem:[#allocation3 + $0x1d8] sm:$0xff]  ;;  %v82_v26 = vld [vmem:[#allocation3 + $0xc8] sm:$0xff] }
  0x12   :  { %167 = vmatpush.msra.mxu0 %v68_v13  ;;  %212 = vmatpush.msra.mxu2 %v101_v15  ;;  %v98_v27 = vld [vmem:[#allocation3 + $0x148] sm:$0xff]  ;;  %v115_v28 = vld [vmem:[#allocation3 + $0x1d0] sm:$0xff]  ;;  %v64_v29 = vld [vmem:[#allocation3 + $0x38] sm:$0xff] }
  0x13   :  { %190 = vmatpush.msra.mxu1 %v84_v18  ;;  %235 = vmatpush.msra.mxu3 %v117_v20  ;;  %v81_v30 = vld [vmem:[#allocation3 + $0xc0] sm:$0xff]  ;;  %v114_v32 = vld [vmem:[#allocation3 + $0x1c8] sm:$0xff]  ;;  %v63_v33 = vld [vmem:[#allocation3 + $0x30] sm:$0xff] }
  0x14   :  { %168 = vmatpush.msra.mxu0 %v67_v17  ;;  %213 = vmatpush.msra.mxu2 %v100_v19  ;;  %v97_v31 = vld [vmem:[#allocation3 + $0x140] sm:$0xff]  ;;  %v80_v34 = vld [vmem:[#allocation3 + $0xb8] sm:$0xff]  ;;  %v62_v37 = vld [vmem:[#allocation3 + $0x28] sm:$0xff] }
  0x15   :  { %191 = vmatpush.msra.mxu1 %v83_v22  ;;  %236 = vmatpush.msra.mxu3 %v116_v24  ;;  %v96_v35 = vld [vmem:[#allocation3 + $0x138] sm:$0xff]  ;;  %v113_v36 = vld [vmem:[#allocation3 + $0x1c0] sm:$0xff]  ;;  %v79_v38 = vld [vmem:[#allocation3 + $0xb0] sm:$0xff] }
  0x16   :  { %169 = vmatpush.msra.mxu0 %v66_v21  ;;  %214 = vmatpush.msra.mxu2 %v99_v23  ;;  %v95_v39 = vld [vmem:[#allocation3 + $0x130] sm:$0xff]  ;;  %v112_v40 = vld [vmem:[#allocation3 + $0x1b8] sm:$0xff]  ;;  %v61_v41 = vld [vmem:[#allocation3 + $0x20] sm:$0xff] }
  0x17   :  { %192 = vmatpush.msra.mxu1 %v82_v26  ;;  %237 = vmatpush.msra.mxu3 %v115_v28  ;;  %v78_v42 = vld [vmem:[#allocation3 + $0xa8] sm:$0xff]  ;;  %v111_v44 = vld [vmem:[#allocation3 + $0x1b0] sm:$0xff]  ;;  %v60_v45 = vld [vmem:[#allocation3 + $0x18] sm:$0xff] }
  0x18   :  { %170 = vmatpush.msra.mxu0 %v65_v25  ;;  %215 = vmatpush.msra.mxu2 %v98_v27  ;;  %v94_v43 = vld [vmem:[#allocation3 + $0x128] sm:$0xff]  ;;  %v77_v46 = vld [vmem:[#allocation3 + $0xa0] sm:$0xff]  ;;  %v59_v49 = vld [vmem:[#allocation3 + $0x10] sm:$0xff] }
  0x19   :  { %193 = vmatpush.msra.mxu1 %v81_v30  ;;  %238 = vmatpush.msra.mxu3 %v114_v32  ;;  %v93_v47 = vld [vmem:[#allocation3 + $0x120] sm:$0xff]  ;;  %v110_v48 = vld [vmem:[#allocation3 + $0x1a8] sm:$0xff]  ;;  %v76_v50 = vld [vmem:[#allocation3 + $0x98] sm:$0xff] }
  0x1a   :  { %171 = vmatpush.msra.mxu0 %v64_v29  ;;  %216 = vmatpush.msra.mxu2 %v97_v31  ;;  %v92_v51 = vld [vmem:[#allocation3 + $0x118] sm:$0xff]  ;;  %v109_v52 = vld [vmem:[#allocation3 + $0x1a0] sm:$0xff]  ;;  %v58_v53 = vld [vmem:[#allocation3 + $0x8] sm:$0xff] }
  0x1b   :  { %194 = vmatpush.msra.mxu1 %v80_v34  ;;  %239 = vmatpush.msra.mxu3 %v113_v36  ;;  %v75_v54 = vld [vmem:[#allocation3 + $0x90] sm:$0xff]  ;;  %v108_v56 = vld [vmem:[#allocation3 + $0x198] sm:$0xff]  ;;  %v57_v57 = vld [vmem:[#allocation3] sm:$0xff] }
  0x1c   :  { %172 = vmatpush.msra.mxu0 %v63_v33  ;;  %217 = vmatpush.msra.mxu2 %v96_v35  ;;  %v91_v55 = vld [vmem:[#allocation3 + $0x110] sm:$0xff]  ;;  %v74_v58 = vld [vmem:[#allocation3 + $0x88] sm:$0xff]  ;;  %v136_v59 = vld [vmem:[#allocation3 + $0x278] sm:$0xff] }
  0x1d   :  { %195 = vmatpush.msra.mxu1 %v79_v38  ;;  %240 = vmatpush.msra.mxu3 %v112_v40  ;;  %v90_v60 = vld [vmem:[#allocation3 + $0x108] sm:$0xff]  ;;  %v107_v61 = vld [vmem:[#allocation3 + $0x190] sm:$0xff]  ;;  %v73_v62 = vld [vmem:[#allocation3 + $0x80] sm:$0xff] }
  0x1e   :  { %173 = vmatpush.msra.mxu0 %v62_v37  ;;  %218 = vmatpush.msra.mxu2 %v95_v39  ;;  %v135_v63 = vld [vmem:[#allocation3 + $0x270] sm:$0xff]  ;;  %v89_v0 = vld [vmem:[#allocation3 + $0x100] sm:$0xff]  ;;  %v106_v1 = vld [vmem:[#allocation3 + $0x188] sm:$0xff] }
  0x1f   :  { %196 = vmatpush.msra.mxu1 %v78_v42  ;;  %241 = vmatpush.msra.mxu3 %v111_v44  ;;  %v147_v2 = vld [vmem:[#allocation3 + $0x2d0] sm:$0xf]  ;;  %v134_v3 = vld [vmem:[#allocation3 + $0x268] sm:$0xff]  ;;  %v105_v5 = vld [vmem:[#allocation3 + $0x180] sm:$0xff] }
  0x20   :  { %174 = vmatpush.msra.mxu0 %v61_v41  ;;  %219 = vmatpush.msra.mxu2 %v94_v43  ;;  %v47_v4 = vld [vmem:[%s629_s0 + $0x10] sm:$0xff]  ;;  %v133_v7 = vld [vmem:[#allocation3 + $0x260] sm:$0xff]  ;;  %v48_v8 = vld [vmem:[%s629_s0 + $0x18] sm:$0xff] }
  0x21   :  { %197 = vmatpush.msra.mxu1 %v77_v46  ;;  %242 = vmatpush.msra.mxu3 %v110_v48  ;;  %v146_v6 = vld [vmem:[#allocation3 + $0x2c8] sm:$0xff]  ;;  %v45_v9 = vld [vmem:[%s629_s0] sm:$0xff]  ;;  %v131_v14 = vld [vmem:[#allocation3 + $0x250] sm:$0xff] }
  0x22   :  { %175 = vmatpush.msra.mxu0 %v60_v45  ;;  %220 = vmatpush.msra.mxu2 %v93_v47  ;;  %v145_v10 = vld [vmem:[#allocation3 + $0x2c0] sm:$0xff]  ;;  %v132_v11 = vld [vmem:[#allocation3 + $0x258] sm:$0xff]  ;;  %v143_v16 = vld [vmem:[#allocation3 + $0x2b0] sm:$0xff] }
  0x23   :  { %198 = vmatpush.msra.mxu1 %v76_v50  ;;  %243 = vmatpush.msra.mxu3 %v109_v52  ;;  %v46_v12 = vld [vmem:[%s629_s0 + $0x8] sm:$0xff]  ;;  %v144_v13 = vld [vmem:[#allocation3 + $0x2b8] sm:$0xff]  ;;  %v321_v17 = vld [vmem:[%s632_s3 + $0x70] sm:$0xff] }
  0x24   :  { %176 = vmatpush.msra.mxu0 %v59_v49  ;;  %221 = vmatpush.msra.mxu2 %v92_v51  ;;  %v322_v15 = vld [vmem:[%s632_s3 + $0x78] sm:$0xff]  ;;  %v130_v18 = vld [vmem:[#allocation3 + $0x248] sm:$0xff]  ;;  %v53_v19 = vld [vmem:[%s629_s0 + $0x40] sm:$0xff] }
  0x25   :  { %199 = vmatpush.msra.mxu1 %v75_v54  ;;  %244 = vmatpush.msra.mxu3 %v108_v56  ;;  %v142_v20 = vld [vmem:[#allocation3 + $0x2a8] sm:$0xff]  ;;  %v129_v22 = vld [vmem:[#allocation3 + $0x240] sm:$0xff]  ;;  %v128_v26 = vld [vmem:[#allocation3 + $0x238] sm:$0xff] }
  0x26   :  { %177 = vmatpush.msra.mxu0 %v58_v53  ;;  %222 = vmatpush.msra.mxu2 %v91_v55  ;;  %v320_v21 = vld [vmem:[%s632_s3 + $0x68] sm:$0xff]  ;;  %v51_v24 = vld [vmem:[%s629_s0 + $0x30] sm:$0xff]  ;;  %v52_v27 = vld [vmem:[%s629_s0 + $0x38] sm:$0xff] }
  0x27   :  { %200 = vmatpush.msra.mxu1 %v74_v58  ;;  %245 = vmatpush.msra.mxu3 %v107_v61  ;;  %v54_v23 = vld [vmem:[%s629_s0 + $0x48] sm:$0xff]  ;;  %v140_v28 = vld [vmem:[#allocation3 + $0x298] sm:$0xff]  ;;  %v127_v30 = vld [vmem:[#allocation3 + $0x230] sm:$0xff] }
  0x28   :  { %178 = vmatpush.msra.mxu0 %v57_v57  ;;  %223 = vmatpush.msra.mxu2 %v90_v60  ;;  %v141_v25 = vld [vmem:[#allocation3 + $0x2a0] sm:$0xff]  ;;  %v139_v31 = vld [vmem:[#allocation3 + $0x290] sm:$0xff]  ;;  %v126_v32 = vld [vmem:[#allocation3 + $0x228] sm:$0xff] }
  0x29   :  { %201 = vmatpush.msra.mxu1 %v73_v62  ;;  %246 = vmatpush.msra.mxu3 %v106_v1  ;;  %v319_v29 = vld [vmem:[%s632_s3 + $0x60] sm:$0xff]  ;;  %v138_v33 = vld [vmem:[#allocation3 + $0x288] sm:$0xff]  ;;  %v123_v38 = vld [vmem:[#allocation3 + $0x210] sm:$0xff] }
  0x2a   :  { %255 = vmatpush.msrb.mxu0 %v136_v59  ;;  %224 = vmatpush.msra.mxu2 %v89_v0  ;;  %v125_v34 = vld [vmem:[#allocation3 + $0x220] sm:$0xff]  ;;  %v124_v36 = vld [vmem:[#allocation3 + $0x218] sm:$0xff]  ;;  %v122_v39 = vld [vmem:[#allocation3 + $0x208] sm:$0xff] }
  0x2b   :  { %414 = vmatpush.msk.msrb.mxu1 %vm159_vm0, %v147_v2  ;;  %225 = vmatmul.f32.vlgmr.msra.gmra.mxu2 %v47_v4  ;;  %v137_v35 = vld [vmem:[#allocation3 + $0x280] sm:$0xff]  ;;  %v56_v42 = vld [vmem:[%s629_s0 + $0x58] sm:$0xff]  ;;  %v55_v43 = vld [vmem:[%s629_s0 + $0x50] sm:$0xff] }
  0x2c   :  { %256 = vmatpush.msrb.mxu0 %v135_v63  ;;  %247 = vmatpush.msra.mxu3 %v105_v5  ;;  %v50_v37 = vld [vmem:[%s629_s0 + $0x28] sm:$0xff]  ;;  %v49_v41 = vld [vmem:[%s629_s0 + $0x20] sm:$0xff]  ;;  %v318_v44 = vld [vmem:[%s632_s3 + $0x58] sm:$0xff] }
  0x2d   :  { %284 = vmatpush.msrb.mxu1 %v146_v6  ;;  %248 = vmatmul.f32.vlgmr.msra.gmra.mxu3 %v48_v8  ;;  %v121_v40 = vld [vmem:[#allocation3 + $0x200] sm:$0xff]  ;;  %v317_v45 = vld [vmem:[%s632_s3 + $0x50] sm:$0xff]  ;;  %v314_v48 = vld [vmem:[%s632_s3 + $0x38] sm:$0xff] }
  0x2e   :  { %257 = vmatpush.msrb.mxu0 %v134_v3  ;;  %202 = vmatmul.f32.vlgmr.msra.gmra.mxu1 %v46_v12  ;;  %v316_v46 = vld [vmem:[%s632_s3 + $0x48] sm:$0xff]  ;;  %v315_v47 = vld [vmem:[%s632_s3 + $0x40] sm:$0xff]  ;;  %v313_v49 = vld [vmem:[%s632_s3 + $0x30] sm:$0xff] }
  0x2f   :  { %179 = vmatmul.f32.vlgmr.msra.gmra.mxu0 %v45_v9  ;;  %285 = vmatpush.msrb.mxu1 %v145_v10  ;;  %v312_v50 = vld [vmem:[%s632_s3 + $0x28] sm:$0xff]  ;;  %v311_v51 = vld [vmem:[%s632_s3 + $0x20] sm:$0xff]  ;;  %v310_v52 = vld [vmem:[%s632_s3 + $0x18] sm:$0xff] }
  0x30   :  { %258 = vmatpush.msrb.mxu0 %v133_v7  ;;  %327 = vmatpush.msrb.mxu2 %v322_v15  ;;  %v309_v53 = vld [vmem:[%s632_s3 + $0x10] sm:$0xff]  ;;  %v308_v54 = vld [vmem:[%s632_s3 + $0x8] sm:$0xff]  ;;  %v307_v55 = vld [vmem:[%s632_s3] sm:$0xff] }
  0x31   :  { %286 = vmatpush.msrb.mxu1 %v144_v13  ;;  %v426_v58 = vld [vmem:[%s631_s2] ss:$0 sm:$0xff] }
  0x32   :  { %259 = vmatpush.msrb.mxu0 %v132_v11  ;;  %328 = vmatpush.msrb.mxu2 %v321_v17 }
  0x33   :  { %287 = vmatpush.msrb.mxu1 %v143_v16  ;;  %228 = vmatmul.f32.gmra.mxu2 %v53_v19 }
  0x34   :  { %260 = vmatpush.msrb.mxu0 %v131_v14  ;;  %329 = vmatpush.msrb.mxu2 %v320_v21  ;;  %v357_v21 = vld [vmem:[#allocation2] sm:$0x1] }
  0x35   :  { %288 = vmatpush.msrb.mxu1 %v142_v20  ;;  %251 = vmatmul.f32.gmra.mxu3 %v54_v23 }
  0x36   :  { %261 = vmatpush.msrb.mxu0 %v130_v18  ;;  %205 = vmatmul.f32.gmra.mxu1 %v52_v27 }
  0x37   :  { %182 = vmatmul.f32.gmra.mxu0 %v51_v24  ;;  %289 = vmatpush.msrb.mxu1 %v141_v25  ;;  %v427_v24 = vld [vmem:[%s633_s4] ss:$0 sm:$0xff]  ;;  %s486_s4 = smov [#allocation6]  }
  0x38   :  { %262 = vmatpush.msrb.mxu0 %v129_v22  ;;  %330 = vmatpush.msrb.mxu2 %v319_v29  ;;  %v485_v22 = vmov 0   ;;  %s402_s17 = sshll.u32 %s486_s4, 4  ;;  %s403_s17 = int_to_ptr.vmem [resolvable:$true] %s402_s17 }
  0x39   :  { %290 = vmatpush.msrb.mxu1 %v140_v28  ;;  %425 = vset.pattern.permute.xlu0 %v485_v22 }
  0x3a   :  { %263 = vmatpush.msrb.mxu0 %v128_v26  ;;  %331 = vmatpush.msrb.mxu2 %v318_v44 }
  0x3b   :  { %291 = vmatpush.msrb.mxu1 %v139_v31  ;;  %360 = vperm.xlu0 %425, %v357_v21  }
  0x3c   :  { %264 = vmatpush.msrb.mxu0 %v127_v30  ;;  %332 = vmatpush.msrb.mxu2 %v317_v45 }
  0x3d   :  { %292 = vmatpush.msrb.mxu1 %v138_v33 }
  0x3e   :  { %265 = vmatpush.msrb.mxu0 %v126_v32  ;;  %333 = vmatpush.msrb.mxu2 %v316_v46  ;;  %v356_v32 = vld [vmem:[%s634_s5] sm:$0x1] }
  0x3f   :  { %293 = vmatpush.msrb.mxu1 %v137_v35 }
  0x40   :  { %266 = vmatpush.msrb.mxu0 %v125_v34  ;;  %415 = vmatmul.msk.f32.vlgmr.msrb.gmra.mxu1 %vm152_vm1, %v50_v37 }
  0x41   :  { %334 = vmatpush.msrb.mxu2 %v315_v47 }
  0x42   :  { %267 = vmatpush.msrb.mxu0 %v124_v36 }
  0x43   :  { %335 = vmatpush.msrb.mxu2 %v314_v48 }
  0x44   :  { %268 = vmatpush.msrb.mxu0 %v123_v38 }
  0x45   :  { %336 = vmatpush.msrb.mxu2 %v313_v49 }
  0x46   :  { %269 = vmatpush.msrb.mxu0 %v122_v39 }
  0x47   :  { %337 = vmatpush.msrb.mxu2 %v312_v50 }
  0x48   :  { %270 = vmatpush.msrb.mxu0 %v121_v40  ;;  %416 = vmatmul.msk.f32.gmra.mxu1 %vm152_vm1, %v56_v42 }
  0x49   :  { %271 = vmatmul.f32.vlgmr.msrb.gmra.mxu0 %v49_v41  ;;  %338 = vmatpush.msrb.mxu2 %v311_v51 }
  0x4b   :  { %339 = vmatpush.msrb.mxu2 %v310_v52 }
  0x4d   :  { %340 = vmatpush.msrb.mxu2 %v309_v53 }
  0x4f   :  { %341 = vmatpush.msrb.mxu2 %v308_v54 }
  0x51   :  { %274 = vmatmul.f32.gmra.mxu0 %v55_v43  ;;  %342 = vmatpush.msrb.mxu2 %v307_v55 }
  0xab   :  { %v203_v56 = vpop.f32.mrf.mxu1 }
  0xac   :  { %v180_v57 = vpop.f32.mrf.mxu0 }
  0xad   :  { %v181_v59 = vadd.f32 %v426_v58, %v180_v57  ;;  %v361_v33 = vpop.permute.xlu0 %360 }
  0xae   :  { %v226_v61 = vpop.f32.mrf.mxu2  ;;  %v363_v34 = vperm.slane %v361_v33, 0 }
  0xaf   :  { %v204_v63 = vadd.f32 %v203_v56, %v181_v59 }
  0xb0   :  { %v249_v0 = vpop.f32.mrf.mxu3 }
  0xb1   :  { %v227_v1 = vadd.f32 %v226_v61, %v204_v63 }
  0xb3   :  { %v206_v60 = vpop.f32.mrf.mxu1  ;;  %v250_v4 = vadd.f32 %v249_v0, %v227_v1 }
  0xb4   :  { %v183_v62 = vpop.f32.mrf.mxu0 }
  0xb5   :  { %v184_v2 = vadd.f32 %v426_v58, %v183_v62 }
  0xb6   :  { %v229_v6 = vpop.f32.mrf.mxu2 }
  0xb7   :  { %v207_v5 = vadd.f32 %v206_v60, %v184_v2 }
  0xb8   :  { %v252_v11 = vpop.f32.mrf.mxu3 }
  0xb9   :  { %v230_v9 = vadd.f32 %v229_v6, %v207_v5 }
  0xbb   :  { %v253_v13 = vadd.f32 %v252_v11, %v230_v9 }
  0xbd   :  { %v295_v3 = vpop.f32.mrf.mxu1 }
  0xc5   :  { %v298_v16 = vpop.f32.mrf.mxu1 }
  0xc6   :  { %v272_v7 = vpop.f32.mrf.mxu0 }
  0xc7   :  { %v273_v8 = vadd.f32 %v272_v7, %v250_v4 }
  0xc9   :  { %v296_v10 = vadd.f32 %v295_v3, %v273_v8 }
  0xcb   :  { %v303_v12 = vmul.f32 0.1, %v296_v10  ;;  %vm301_vm2 = vcmp.ge.f32.partialorder %v296_v10, 0.0 }
  0xcd   :  { %v305_v14 = vsel %vm301_vm2, %v296_v10, %v303_v12 }
  0xce   :  { %v275_v15 = vpop.f32.mrf.mxu0  ;;  %343 = vmatmul.f32.vlgmr.msrb.gmra.mxu2 %v305_v14 }
  0xcf   :  { %v276_v17 = vadd.f32 %v275_v15, %v253_v13 }
  0xd1   :  { %v299_v18 = vadd.f32 %v298_v16, %v276_v17 }
  0xd3   :  { %vm302_vm3 = vcmp.ge.f32.partialorder %v299_v18, 0.0  ;;  %v304_v19 = vmul.f32 0.1, %v299_v18 }
  0xd5   :  { %v306_v20 = vsel %vm302_vm3, %v299_v18, %v304_v19 }
  0xd6   :  { %346 = vmatmul.f32.gmra.mxu2 %v306_v20 }
 0x151   :  { %v344_v23 = vpop.f32.mrf.mxu2 }
 0x152   :  { %v345_v26 = vadd.f32 %v427_v24, %v344_v23 }
 0x154   :  { %v352_v29 = vmul.f32 0.1, %v345_v26  ;;  %vm350_vm6 = vcmp.ge.f32.partialorder %v345_v26, 0.0 }
 0x156   :  { %v354_v31 = vsel %vm350_vm6, %v345_v26, %v352_v29 }
 0x159   :  { %v347_v25 = vpop.f32.mrf.mxu2 }
 0x15a   :  { %v348_v27 = vadd.f32 %v427_v24, %v347_v25 }
 0x15c   :  { %v353_v28 = vmul.f32 0.1, %v348_v27  ;;  %vm351_vm4 = vcmp.ge.f32.partialorder %v348_v27, 0.0 }
 0x15e   :  { %v355_v30 = vsel %vm351_vm4, %v348_v27, %v353_v28 }
 0x15f   :  { %417 = vmatpush.xpose.msk.msrb.mxu3 %vm364_vm5, %v355_v30 }
 0x163   :  { %418 = vmatpush.xpose.msk.msrb.mxu3 %vm364_vm5, %v354_v31 }
 0x166   :  { %419 = vmatmul.msk.f32.vlgmr.msrb.gmra.mxu3 %vm364_vm5, %v356_v32 }
 0x1e9   :  { %v391_v35 = vpop.f32.mrf.mxu3 }
 0x1ea   :  { %v392_v36 = vadd.f32 %v391_v35, %v363_v34 }
 0x1ec   :  { %428 = vtanh.f32 %v392_v36 }
 0x1f2   :  { %v429_v37 = vpop.eup %428 }
 0x1f3   :  { %396 = vst.msk [vmem:[#allocation6] sm:$0x1] %vm395_vm7, %v429_v37 }
 0x1f4   :  { %407 = dma.vmem_to_hbm [thread:$0]  %s403_s17, 16, %s405_s20, [#allocation5]  }
 0x1f5   :  { %480 = dma.done.wait [#allocation5], 16  }
 0x1f6   :  { %481 = vsyncadd [#allocation5], 4294967280 }
 0x1f7   :  { %412 = vsyncpa [#allocation4], 1 }
 0x1f8   :  { %413 = vsyncpa [#allocation5], 1 }

</bundles_post_ra>
